<compile_context>
chip_gen: v5e
topology: v5e:2x2
jax: 0.10.0
libtpu: 0.0.40
codegen_flags: <defaults>
</compile_context>

<pallas_src>
import functools

import jax
import jax.numpy as jnp
from jax.experimental import pallas as pl
from jax.experimental.pallas import tpu as pltpu

_NEG = -1e30  # "minus infinity" that stays finite under f32 arithmetic


def _round_up(x, m):
    return ((x + m - 1) // m) * m


# ----------------------------------------------------------------------------
# Fused  (X @ W + b) -> online log-softmax -> masked CE  Pallas kernel
#   grid = (row_tiles, class_tiles); the class axis streams W tiles through an
#   online (running max / running sum / running target-logit) reduction held in
#   VMEM scratch.  At the last class tile the per-row losses are reduced to a
#   single lane-dense (8,128) output block per row tile.
# ----------------------------------------------------------------------------
def _linear_ce_kernel(x_ref, w_ref, b_ref, lbl_ref, valid_ref, out_ref,
                      m_scr, l_scr, t_scr, *, n_rows, n_cls, tm, tc):
    i = pl.program_id(0)          # row-tile index   ("parallel")
    j = pl.program_id(1)          # class-tile index ("arbitrary" / reduction)

    @pl.when(j == 0)
    def _init():
        m_scr[...] = jnp.full_like(m_scr, _NEG)
        t_scr[...] = jnp.full_like(t_scr, _NEG)
        l_scr[...] = jnp.zeros_like(l_scr)

    # bf16 operands, f32 accumulation on the MXU.
    logits = jnp.dot(x_ref[...], w_ref[...], preferred_element_type=jnp.float32)
    logits = logits + b_ref[...]

    # Mask padded / out-of-bounds class columns (no padded W copy in HBM).
    col = j * tc + jax.lax.broadcasted_iota(jnp.int32, (tm, tc), 1)
    logits = jnp.where(col < n_cls, logits, _NEG)

    # Target logit via masked-max select (fused with the sweep, no one-hot).
    is_tgt = col == lbl_ref[...]
    t_here = jnp.max(jnp.where(is_tgt, logits, _NEG), axis=-1, keepdims=True)
    t_scr[...] = jnp.maximum(t_scr[...], t_here)

    # Online log-sum-exp across class tiles.
    m_prev = m_scr[...]
    m_new = jnp.maximum(m_prev, jnp.max(logits, axis=-1, keepdims=True))
    l_scr[...] = (l_scr[...] * jnp.exp(m_prev - m_new)
                  + jnp.sum(jnp.exp(logits - m_new), axis=-1, keepdims=True))
    m_scr[...] = m_new

    @pl.when(j == pl.num_programs(1) - 1)
    def _finalize():
        # Mask remainder rows of the last (partial) row tile in-kernel.
        row = i * tm + jax.lax.broadcasted_iota(jnp.int32, (tm, 1), 0)
        v = jnp.where(row < n_rows, valid_ref[...], 0.0)
        lse = m_scr[...] + jnp.log(l_scr[...])
        per_row = jnp.where(v > 0.0, (lse - t_scr[...]) * v, 0.0)   # (tm, 1)
        loss_sum = jnp.sum(per_row, axis=0, keepdims=True)          # (1, 1)
        cnt_sum = jnp.sum(v, axis=0, keepdims=True)                 # (1, 1)
        r8 = jax.lax.broadcasted_iota(jnp.int32, (8, 128), 0)
        c128 = jax.lax.broadcasted_iota(jnp.int32, (8, 128), 1)
        blk = jnp.where((r8 == 0) & (c128 == 0), loss_sum, 0.0)
        blk = jnp.where((r8 == 0) & (c128 == 1), cnt_sum, blk)
        out_ref[...] = blk


def linear_cross_entropy(x, w, b, labels, valid, *, tm=None, tc=None):
    """mean_i CE(softmax(x_i @ w + b), labels_i) over rows where valid_i == 1.

    Class-tiled (streaming LSE), bf16 matmul / f32 softmax, in-kernel loss and
    valid-count reduction.  No padded HBM copies of X / labels / valid.
    """
    n, d = x.shape
    d2, c = w.shape
    assert d == d2
    if tm is None:
        tm = min(256, _round_up(n, 8))       # 256 saturates the MXU on v6e/v7x
    if tc is None:
        tc = min(512, _round_up(c, 128))     # ~0.75 MB bf16 W tile at d=768

    n_row_tiles = pl.cdiv(n, tm)
    n_cls_tiles = pl.cdiv(c, tc)

    xb = x.astype(jnp.bfloat16)
    wb = w.astype(jnp.bfloat16)
    bf = b.reshape(1, c).astype(jnp.float32)
    lbl = labels.reshape(n, 1).astype(jnp.int32)
    val = valid.reshape(n, 1).astype(jnp.float32)

    kernel = functools.partial(_linear_ce_kernel,
                               n_rows=n, n_cls=c, tm=tm, tc=tc)

    out = pl.pallas_call(
        kernel,
        out_shape=jax.ShapeDtypeStruct((n_row_tiles * 8, 128), jnp.float32),
        grid_spec=pltpu.PrefetchScalarGridSpec(
            num_scalar_prefetch=0,
            grid=(n_row_tiles, n_cls_tiles),
            in_specs=[
                pl.BlockSpec((tm, d), lambda i, j: (i, 0)),   # X   (resident over j)
                pl.BlockSpec((d, tc), lambda i, j: (0, j)),   # W   (streamed over j)
                pl.BlockSpec((1, tc), lambda i, j: (0, j)),   # b
                pl.BlockSpec((tm, 1), lambda i, j: (i, 0)),   # labels
                pl.BlockSpec((tm, 1), lambda i, j: (i, 0)),   # valid
            ],
            out_specs=pl.BlockSpec((8, 128), lambda i, j: (i, 0)),
            scratch_shapes=[
                pltpu.VMEM((tm, 1), jnp.float32),   # running max
                pltpu.VMEM((tm, 1), jnp.float32),   # running sum-exp
                pltpu.VMEM((tm, 1), jnp.float32),   # running target logit
            ],
        ),
        compiler_params=pltpu.CompilerParams(
            dimension_semantics=("parallel", "arbitrary"),
            vmem_limit_bytes=32 * 1024 * 1024,
        ),
    )(xb, wb, bf, lbl, val)

    total = jnp.sum(out[:, 0])
    count = jnp.maximum(jnp.sum(out[:, 1]), 1.0)
    return total / count


# ----------------------------------------------------------------------------
# Plain-JAX CE (used for the tiny KPL/RPC heads and as the reference check)
# ----------------------------------------------------------------------------
def _ce_jax(x, w, b, labels, valid, *, compute_dtype=jnp.float32):
    logits = jnp.dot(x.astype(compute_dtype), w.astype(compute_dtype),
                     preferred_element_type=jnp.float32)
    logits = logits + b[None, :].astype(jnp.float32)
    m = jnp.max(logits, axis=-1, keepdims=True)
    lse = m[:, 0] + jnp.log(jnp.sum(jnp.exp(logits - m), axis=-1))
    tgt = jnp.take_along_axis(logits, labels[:, None].astype(jnp.int32), axis=-1)[:, 0]
    per = (lse - tgt) * valid.astype(jnp.float32)
    return jnp.sum(per) / jnp.maximum(jnp.sum(valid), 1.0)


# ----------------------------------------------------------------------------
# Parameters / forward
# ----------------------------------------------------------------------------
def init_params(key, vocab_size, embed_dim, grid_size, num_directions):
    ks = jax.random.split(key, 4)
    s = 0.02
    return {
        "mvlm_w": s * jax.random.normal(ks[0], (embed_dim, vocab_size), jnp.float32),
        "mvlm_b": jnp.zeros((vocab_size,), jnp.float32),
        "kpl_w": s * jax.random.normal(ks[1], (2, grid_size * grid_size), jnp.float32),
        "kpl_b": jnp.zeros((grid_size * grid_size,), jnp.float32),
        "rpc_w": s * jax.random.normal(ks[2], (2, num_directions), jnp.float32),
        "rpc_b": jnp.zeros((num_directions,), jnp.float32),
        "wpa_w": s * jax.random.normal(ks[3], (embed_dim, embed_dim), jnp.float32),
        "wpa_b": jnp.zeros((embed_dim,), jnp.float32),
    }


def _build_heads(params, inputs, masks, key_points, relative_positions,
                 word_embeds, patch_embeds, *, grid_size, num_directions):
    B, S, E = inputs.shape

    # MVLM: LM head + CE with ignore_index = -100
    x = inputs.reshape(B * S, E).astype(jnp.float32)
    lbl = masks.reshape(-1)
    valid = (lbl >= 0).astype(jnp.float32)
    lbl = jnp.where(lbl >= 0, lbl, 0).astype(jnp.int32)
    mvlm = (x, params["mvlm_w"], params["mvlm_b"], lbl, valid)

    # KPL: classify key-point coords into grid_size x grid_size cells
    kp = key_points.reshape(-1, 2).astype(jnp.float32)
    gx = jnp.clip(jnp.floor(kp[:, 0] * grid_size), 0, grid_size - 1).astype(jnp.int32)
    gy = jnp.clip(jnp.floor(kp[:, 1] * grid_size), 0, grid_size - 1).astype(jnp.int32)
    kpl = (kp, params["kpl_w"], params["kpl_b"], gy * grid_size + gx,
           jnp.ones((kp.shape[0],), jnp.float32))

    # RPC: classify relative offsets into num_directions angular bins
    rp = relative_positions.reshape(-1, 2).astype(jnp.float32)
    ang = jnp.arctan2(rp[:, 1], rp[:, 0])
    bins = jnp.clip(jnp.floor((ang + jnp.pi) / (2.0 * jnp.pi) * num_directions),
                    0, num_directions - 1).astype(jnp.int32)
    rpc = (rp, params["rpc_w"], params["rpc_b"], bins,
           jnp.ones((rp.shape[0],), jnp.float32))

    # WPA: contrastive word-patch alignment (word_i <-> patch_i).
    # TODO(synk): fuse this projection into the CE kernel to save one HBM
    # round-trip of wproj; XLA handles the plain (n,E)@(E,E) matmul fine.
    wf = word_embeds.reshape(-1, E).astype(jnp.float32)
    pf = patch_embeds.reshape(-1, E).astype(jnp.float32)
    wproj = wf @ params["wpa_w"] + params["wpa_b"][None, :]
    n = wf.shape[0]
    wpa = (wproj, pf.T / jnp.sqrt(jnp.float32(E)),
           jnp.zeros((n,), jnp.float32),
           jnp.arange(n, dtype=jnp.int32),
           jnp.ones((n,), jnp.float32))
    return mvlm, kpl, rpc, wpa


def pretraining_forward(params, inputs, masks, key_points, relative_positions,
                        word_embeds, patch_embeds, *, grid_size, num_directions,
                        use_pallas=True):
    mvlm, kpl, rpc, wpa = _build_heads(
        params, inputs, masks, key_points, relative_positions,
        word_embeds, patch_embeds, grid_size=grid_size,
        num_directions=num_directions)

    if use_pallas:
        big_ce = linear_cross_entropy
    else:
        # Reference path matches the kernel's bf16-matmul / f32-softmax numerics.
        big_ce = functools.partial(_ce_jax, compute_dtype=jnp.bfloat16)
    # Tiny heads (feature_dim = 2, <= grid_size^2 classes): plain JAX / XLA,
    # identical in both paths.
    small_ce = _ce_jax

    mvlm_loss = big_ce(*mvlm)
    kpl_loss = small_ce(*kpl)
    rpc_loss = small_ce(*rpc)
    wpa_loss = big_ce(*wpa)
    return mvlm_loss + kpl_loss + rpc_loss + wpa_loss


if __name__ == "__main__":
    vocab_size, embed_dim = 100, 32
    grid_size, num_directions = 7, 8
    B, S = 2, 8

    key = jax.random.PRNGKey(0)
    ks = jax.random.split(key, 7)
    inputs = jax.random.normal(ks[0], (B, S, embed_dim), jnp.float32)
    masks = jax.random.randint(ks[1], (B, S), 0, vocab_size)
    ignore = jax.random.uniform(ks[2], (B, S)) < 0.25
    masks = jnp.where(ignore, -100, masks)                      # HF-style ignore index
    key_points = jax.random.uniform(ks[3], (B, S, 2))
    relative_positions = jax.random.normal(ks[4], (B, S, 2), jnp.float32)
    word_embeds = jax.random.normal(ks[5], (B, S, embed_dim), jnp.float32)
    patch_embeds = jax.random.normal(ks[6], (B, S, embed_dim), jnp.float32)

    params = init_params(jax.random.PRNGKey(42), vocab_size, embed_dim,
                         grid_size, num_directions)

    total = pretraining_forward(params, inputs, masks, key_points, relative_positions,
                                word_embeds, patch_embeds, grid_size=grid_size,
                                num_directions=num_directions, use_pallas=True)
    total = jax.block_until_ready(total)

    ref = pretraining_forward(params, inputs, masks, key_points, relative_positions,
                              word_embeds, patch_embeds, grid_size=grid_size,
                              num_directions=num_directions, use_pallas=False)
    ref = jax.block_until_ready(ref)

    assert bool(jnp.isfinite(total)), "non-finite loss"
    assert abs(float(total) - float(ref)) < 1e-3 * (1.0 + abs(float(ref))), \
        f"pallas={float(total)} ref={float(ref)}"
    print("KERNEL_OK")
</pallas_src>

<mosaic_0001>
module attributes {stable_mosaic.version = 11 : i64} {
  func.func @_linear_ce_kernel(%arg0: i32, %arg1: i32, %arg2: memref<16x32xbf16, #tpu.memory_space<vmem>>, %arg3: memref<32x128xbf16, #tpu.memory_space<vmem>>, %arg4: memref<1x128xf32, #tpu.memory_space<vmem>>, %arg5: memref<16x1xi32, #tpu.memory_space<vmem>>, %arg6: memref<16x1xf32, #tpu.memory_space<vmem>>, %arg7: memref<8x128xf32, #tpu.memory_space<vmem>>, %arg8: memref<16x1xf32, #tpu.memory_space<vmem>>, %arg9: memref<16x1xf32, #tpu.memory_space<vmem>>, %arg10: memref<16x1xf32, #tpu.memory_space<vmem>>) attributes {dimension_semantics = [#tpu.dimension_semantics<parallel>, #tpu.dimension_semantics<arbitrary>], iteration_bounds = array<i64: 1, 1>, scalar_prefetch = 0 : i64, scratch_operands = 3 : i64, tpu.core_type = #tpu.core_type<tc>, window_params = [{transform_indices = @transform_0, window_bounds = array<i64: 16, 32>}, {transform_indices = @transform_1, window_bounds = array<i64: 32, 128>}, {transform_indices = @transform_2, window_bounds = array<i64: 1, 128>}, {transform_indices = @transform_3, window_bounds = array<i64: 16, 1>}, {transform_indices = @transform_4, window_bounds = array<i64: 16, 1>}, {transform_indices = @transform_5, window_bounds = array<i64: 8, 128>}]} {
    %c0_i32 = arith.constant 0 : i32
    %0 = arith.cmpi eq, %arg1, %c0_i32 : i32
    %1 = arith.extui %0 : i1 to i32
    %c0_i32_0 = arith.constant 0 : i32
    %2 = arith.cmpi ne, %1, %c0_i32_0 : i32
    scf.if %2 {
      %cst_27 = arith.constant -1.000000e+30 : f32
      %46 = vector.broadcast %cst_27 : f32 to vector<16x1xf32>
      %c0_28 = arith.constant 0 : index
      %c0_29 = arith.constant 0 : index
      %47 = vector.load %arg8[%c0_28, %c0_29] : memref<16x1xf32, #tpu.memory_space<vmem>>, vector<16x1xf32>
      tpu.vector_store %arg8[%c0_28, %c0_29], %46 {strides = array<i32>} : memref<16x1xf32, #tpu.memory_space<vmem>>, vector<16x1xf32>,
      %cst_30 = arith.constant -1.000000e+30 : f32
      %48 = vector.broadcast %cst_30 : f32 to vector<16x1xf32>
      %c0_31 = arith.constant 0 : index
      %c0_32 = arith.constant 0 : index
      %49 = vector.load %arg10[%c0_31, %c0_32] : memref<16x1xf32, #tpu.memory_space<vmem>>, vector<16x1xf32>
      tpu.vector_store %arg10[%c0_31, %c0_32], %48 {strides = array<i32>} : memref<16x1xf32, #tpu.memory_space<vmem>>, vector<16x1xf32>,
      %cst_33 = arith.constant 0.000000e+00 : f32
      %50 = vector.broadcast %cst_33 : f32 to vector<16x1xf32>
      %c0_34 = arith.constant 0 : index
      %c0_35 = arith.constant 0 : index
      %51 = vector.load %arg9[%c0_34, %c0_35] : memref<16x1xf32, #tpu.memory_space<vmem>>, vector<16x1xf32>
      tpu.vector_store %arg9[%c0_34, %c0_35], %50 {strides = array<i32>} : memref<16x1xf32, #tpu.memory_space<vmem>>, vector<16x1xf32>,
    } else {
    }
    %c0 = arith.constant 0 : index
    %c0_1 = arith.constant 0 : index
    %3 = vector.load %arg2[%c0, %c0_1] : memref<16x32xbf16, #tpu.memory_space<vmem>>, vector<16x32xbf16>
    %c0_2 = arith.constant 0 : index
    %c0_3 = arith.constant 0 : index
    %4 = vector.load %arg3[%c0_2, %c0_3] : memref<32x128xbf16, #tpu.memory_space<vmem>>, vector<32x128xbf16>
    %cst = arith.constant dense<0.000000e+00> : vector<16x128xf32>
    %5 = tpu.matmul %3, %4, %cst {dimension_numbers = #tpu.dot_dimension_numbers<[1], [0], [0], [1], [0, 0, 1, 1], [], []>} : vector<16x32xbf16>, vector<32x128xbf16>, vector<16x128xf32> -> vector<16x128xf32>
    %c0_4 = arith.constant 0 : index
    %c0_5 = arith.constant 0 : index
    %6 = vector.load %arg4[%c0_4, %c0_5] : memref<1x128xf32, #tpu.memory_space<vmem>>, vector<1x128xf32>
    %7 = vector.broadcast %6 : vector<1x128xf32> to vector<16x128xf32>
    %8 = arith.addf %5, %7 : vector<16x128xf32>
    %c128_i32 = arith.constant 128 : i32
    %9 = arith.muli %arg1, %c128_i32 : i32
    %10 = tpu.iota {dimensions = array<i32: 1>} : vector<16x128xi32>
    %11 = vector.broadcast %9 : i32 to vector<16x128xi32>
    %12 = arith.addi %11, %10 : vector<16x128xi32>
    %c100_i32 = arith.constant 100 : i32
    %13 = vector.broadcast %c100_i32 : i32 to vector<16x128xi32>
    %14 = arith.cmpi slt, %12, %13 : vector<16x128xi32>
    %cst_6 = arith.constant -1.000000e+30 : f32
    %15 = vector.broadcast %cst_6 : f32 to vector<16x128xf32>
    %16 = arith.select %14, %8, %15 : vector<16x128xi1>, vector<16x128xf32>
    %c0_7 = arith.constant 0 : index
    %c0_8 = arith.constant 0 : index
    %17 = vector.load %arg5[%c0_7, %c0_8] : memref<16x1xi32, #tpu.memory_space<vmem>>, vector<16x1xi32>
    %18 = vector.broadcast %17 : vector<16x1xi32> to vector<16x128xi32>
    %19 = arith.cmpi eq, %12, %18 : vector<16x128xi32>
    %cst_9 = arith.constant -1.000000e+30 : f32
    %20 = vector.broadcast %cst_9 : f32 to vector<16x128xf32>
    %21 = arith.select %19, %16, %20 : vector<16x128xi1>, vector<16x128xf32>
    %cst_10 = arith.constant dense<0xFF800000> : vector<16xf32>
    %22 = vector.multi_reduction <maximumf>, %21, %cst_10 [1] : vector<16x128xf32> to vector<16xf32>
    %23 = vector.shape_cast %22 : vector<16xf32> to vector<16x1xf32>
    %c0_11 = arith.constant 0 : index
    %c0_12 = arith.constant 0 : index
    %24 = vector.load %arg10[%c0_11, %c0_12] : memref<16x1xf32, #tpu.memory_space<vmem>>, vector<16x1xf32>
    %25 = arith.maximumf %24, %23 : vector<16x1xf32>
    %c0_13 = arith.constant 0 : index
    %c0_14 = arith.constant 0 : index
    %26 = vector.load %arg10[%c0_13, %c0_14] : memref<16x1xf32, #tpu.memory_space<vmem>>, vector<16x1xf32>
    tpu.vector_store %arg10[%c0_13, %c0_14], %25 {strides = array<i32>} : memref<16x1xf32, #tpu.memory_space<vmem>>, vector<16x1xf32>,
    %c0_15 = arith.constant 0 : index
    %c0_16 = arith.constant 0 : index
    %27 = vector.load %arg8[%c0_15, %c0_16] : memref<16x1xf32, #tpu.memory_space<vmem>>, vector<16x1xf32>
    %cst_17 = arith.constant dense<0xFF800000> : vector<16xf32>
    %28 = vector.multi_reduction <maximumf>, %16, %cst_17 [1] : vector<16x128xf32> to vector<16xf32>
    %29 = vector.shape_cast %28 : vector<16xf32> to vector<16x1xf32>
    %30 = arith.maximumf %27, %29 : vector<16x1xf32>
    %c0_18 = arith.constant 0 : index
    %c0_19 = arith.constant 0 : index
    %31 = vector.load %arg9[%c0_18, %c0_19] : memref<16x1xf32, #tpu.memory_space<vmem>>, vector<16x1xf32>
    %32 = arith.subf %27, %30 : vector<16x1xf32>
    %33 = math.exp %32 : vector<16x1xf32>
    %34 = arith.mulf %31, %33 : vector<16x1xf32>
    %35 = vector.broadcast %30 : vector<16x1xf32> to vector<16x128xf32>
    %36 = arith.subf %16, %35 : vector<16x128xf32>
    %37 = math.exp %36 : vector<16x128xf32>
    %cst_20 = arith.constant dense<0.000000e+00> : vector<16xf32>
    %38 = vector.multi_reduction <add>, %37, %cst_20 [1] : vector<16x128xf32> to vector<16xf32>
    %39 = vector.shape_cast %38 : vector<16xf32> to vector<16x1xf32>
    %40 = arith.addf %34, %39 : vector<16x1xf32>
    %c0_21 = arith.constant 0 : index
    %c0_22 = arith.constant 0 : index
    %41 = vector.load %arg9[%c0_21, %c0_22] : memref<16x1xf32, #tpu.memory_space<vmem>>, vector<16x1xf32>
    tpu.vector_store %arg9[%c0_21, %c0_22], %40 {strides = array<i32>} : memref<16x1xf32, #tpu.memory_space<vmem>>, vector<16x1xf32>,
    %c0_23 = arith.constant 0 : index
    %c0_24 = arith.constant 0 : index
    %42 = vector.load %arg8[%c0_23, %c0_24] : memref<16x1xf32, #tpu.memory_space<vmem>>, vector<16x1xf32>
    tpu.vector_store %arg8[%c0_23, %c0_24], %30 {strides = array<i32>} : memref<16x1xf32, #tpu.memory_space<vmem>>, vector<16x1xf32>,
    %c0_i32_25 = arith.constant 0 : i32
    %43 = arith.cmpi eq, %arg1, %c0_i32_25 : i32
    %44 = arith.extui %43 : i1 to i32
    %c0_i32_26 = arith.constant 0 : i32
    %45 = arith.cmpi ne, %44, %c0_i32_26 : i32
    scf.if %45 {
      %c16_i32 = arith.constant 16 : i32
      %46 = arith.muli %arg0, %c16_i32 : i32
      %47 = tpu.iota {dimensions = array<i32: 0>} : vector<16x1xi32>
      %48 = vector.broadcast %46 : i32 to vector<16x1xi32>
      %49 = arith.addi %48, %47 : vector<16x1xi32>
      %c16_i32_27 = arith.constant 16 : i32
      %50 = vector.broadcast %c16_i32_27 : i32 to vector<16x1xi32>
      %51 = arith.cmpi slt, %49, %50 : vector<16x1xi32>
      %c0_28 = arith.constant 0 : index
      %c0_29 = arith.constant 0 : index
      %52 = vector.load %arg6[%c0_28, %c0_29] : memref<16x1xf32, #tpu.memory_space<vmem>>, vector<16x1xf32>
      %cst_30 = arith.constant 0.000000e+00 : f32
      %53 = vector.broadcast %cst_30 : f32 to vector<16x1xf32>
      %54 = arith.select %51, %52, %53 : vector<16x1xi1>, vector<16x1xf32>
      %c0_31 = arith.constant 0 : index
      %c0_32 = arith.constant 0 : index
      %55 = vector.load %arg8[%c0_31, %c0_32] : memref<16x1xf32, #tpu.memory_space<vmem>>, vector<16x1xf32>
      %c0_33 = arith.constant 0 : index
      %c0_34 = arith.constant 0 : index
      %56 = vector.load %arg9[%c0_33, %c0_34] : memref<16x1xf32, #tpu.memory_space<vmem>>, vector<16x1xf32>
      %57 = math.log %56 : vector<16x1xf32>
      %58 = arith.addf %55, %57 : vector<16x1xf32>
      %cst_35 = arith.constant 0.000000e+00 : f32
      %59 = vector.broadcast %cst_35 : f32 to vector<16x1xf32>
      %60 = arith.cmpf ogt, %54, %59 : vector<16x1xf32>
      %c0_36 = arith.constant 0 : index
      %c0_37 = arith.constant 0 : index
      %61 = vector.load %arg10[%c0_36, %c0_37] : memref<16x1xf32, #tpu.memory_space<vmem>>, vector<16x1xf32>
      %62 = arith.subf %58, %61 : vector<16x1xf32>
      %63 = arith.mulf %62, %54 : vector<16x1xf32>
      %cst_38 = arith.constant 0.000000e+00 : f32
      %64 = vector.broadcast %cst_38 : f32 to vector<16x1xf32>
      %65 = arith.select %60, %63, %64 : vector<16x1xi1>, vector<16x1xf32>
      %cst_39 = arith.constant dense<0.000000e+00> : vector<1xf32>
      %66 = vector.multi_reduction <add>, %65, %cst_39 [0] : vector<16x1xf32> to vector<1xf32>
      %67 = vector.shape_cast %66 : vector<1xf32> to vector<1x1xf32>
      %cst_40 = arith.constant dense<0.000000e+00> : vector<1xf32>
      %68 = vector.multi_reduction <add>, %54, %cst_40 [0] : vector<16x1xf32> to vector<1xf32>
      %69 = vector.shape_cast %68 : vector<1xf32> to vector<1x1xf32>
      %70 = tpu.iota {dimensions = array<i32: 0>} : vector<8x128xi32>
      %71 = tpu.iota {dimensions = array<i32: 1>} : vector<8x128xi32>
      %c0_i32_41 = arith.constant 0 : i32
      %72 = vector.broadcast %c0_i32_41 : i32 to vector<8x128xi32>
      %73 = arith.cmpi eq, %70, %72 : vector<8x128xi32>
      %c0_i32_42 = arith.constant 0 : i32
      %74 = vector.broadcast %c0_i32_42 : i32 to vector<8x128xi32>
      %75 = arith.cmpi eq, %71, %74 : vector<8x128xi32>
      %76 = arith.andi %73, %75 : vector<8x128xi1>
      %cst_43 = arith.constant 0.000000e+00 : f32
      %77 = vector.shape_cast %67 : vector<1x1xf32> to vector<1x1xf32>
      %78 = vector.broadcast %77 : vector<1x1xf32> to vector<8x128xf32>
      %79 = vector.broadcast %cst_43 : f32 to vector<8x128xf32>
      %80 = arith.select %76, %78, %79 : vector<8x128xi1>, vector<8x128xf32>
      %c0_i32_44 = arith.constant 0 : i32
      %81 = vector.broadcast %c0_i32_44 : i32 to vector<8x128xi32>
      %82 = arith.cmpi eq, %70, %81 : vector<8x128xi32>
      %c1_i32 = arith.constant 1 : i32
      %83 = vector.broadcast %c1_i32 : i32 to vector<8x128xi32>
      %84 = arith.cmpi eq, %71, %83 : vector<8x128xi32>
      %85 = arith.andi %82, %84 : vector<8x128xi1>
      %86 = vector.shape_cast %69 : vector<1x1xf32> to vector<1x1xf32>
      %87 = vector.broadcast %86 : vector<1x1xf32> to vector<8x128xf32>
      %88 = arith.select %85, %87, %80 : vector<8x128xi1>, vector<8x128xf32>
      %c0_45 = arith.constant 0 : index
      %c0_46 = arith.constant 0 : index
      %89 = vector.load %arg7[%c0_45, %c0_46] : memref<8x128xf32, #tpu.memory_space<vmem>>, vector<8x128xf32>
      tpu.vector_store %arg7[%c0_45, %c0_46], %88 {strides = array<i32>} : memref<8x128xf32, #tpu.memory_space<vmem>>, vector<8x128xf32>,
    } else {
    }
    return
  }
  func.func @transform_0(%arg0: i32, %arg1: i32) -> (i32, i32) {
    %c0_i32 = arith.constant 0 : i32
    %c0_i32_0 = arith.constant 0 : i32
    return %arg0, %c0_i32 : i32, i32
  }
  func.func @transform_1(%arg0: i32, %arg1: i32) -> (i32, i32) {
    %c0_i32 = arith.constant 0 : i32
    %c0_i32_0 = arith.constant 0 : i32
    return %c0_i32, %arg1 : i32, i32
  }
  func.func @transform_2(%arg0: i32, %arg1: i32) -> (i32, i32) {
    %c0_i32 = arith.constant 0 : i32
    %c0_i32_0 = arith.constant 0 : i32
    return %c0_i32, %arg1 : i32, i32
  }
  func.func @transform_3(%arg0: i32, %arg1: i32) -> (i32, i32) {
    %c0_i32 = arith.constant 0 : i32
    %c0_i32_0 = arith.constant 0 : i32
    return %arg0, %c0_i32 : i32, i32
  }
  func.func @transform_4(%arg0: i32, %arg1: i32) -> (i32, i32) {
    %c0_i32 = arith.constant 0 : i32
    %c0_i32_0 = arith.constant 0 : i32
    return %arg0, %c0_i32 : i32, i32
  }
  func.func @transform_5(%arg0: i32, %arg1: i32) -> (i32, i32) {
    %c0_i32 = arith.constant 0 : i32
    %c0_i32_0 = arith.constant 0 : i32
    return %arg0, %c0_i32 : i32, i32
  }
}

</mosaic_0001>

<bundles_post_ra>
// kernel: tpu_custom_call.1
= control target key start
LH: loop header
LB: loop body
LE: loop exit
PB: predicated region body
PF: predicated region fallthrough
CT: control target
= control target key end

     0   :  { %v303_v1 = vmov 0   ;;  %s399_s0 = inlined_call_operand.vmem [shape: bf16[16,32], index: 0, kind: input, shape index: {}]   ;;  %s400_s1 = inlined_call_operand.vmem [shape: bf16[32,100], index: 1, kind: input, shape index: {}]   ;;  %s401_s2 = inlined_call_operand.vmem [shape: f32[1,100], index: 2, kind: input, shape index: {}]   ;;  %s402_s3 = inlined_call_operand.vmem [shape: s32[16,1], index: 3, kind: input, shape index: {}]   ;;  %s403_s4 = inlined_call_operand.vmem [shape: f32[16,1], index: 4, kind: input, shape index: {}]   ;;  %s404_s5 = inlined_call_operand.hbm [shape: f32[8,128], index: 5, kind: output, shape index: {}]  }
   0x1   :  { %v256_v0 = vld [vmem:[%s400_s1 + $0x8] sm:$0xff]  ;;  %262 = vset.pattern.permute.xlu2 %v303_v1  ;;  %v86_v2 = vld [vmem:[%s402_s3] sm:$0xff]  ;;  %261 = vset.pattern.permute.xlu1 %v303_v1 }
   0x2   :  { %70 = vmatpush.bf16.msra.mxu0 %v256_v0  ;;  %v255_v3 = vld [vmem:[%s400_s1] sm:$0xff]  ;;  %89 = vperm.xlu2 %262, %v86_v2  }
   0x3   :  { %10 = vsyncpa [#allocation6], 0  ;;  %263 = vset.pattern.permute.xlu0 %v303_v1  ;;  %v254_v4 = vld [vmem:[%s399_s0] sm:$0xff]  ;;  %vm60_vm0 = vcmask 261120   ;;  %v87_v5 = vld [vmem:[%s402_s3 + $0x8] sm:$0xff]  ;;  %v79_v6 = vlaneseq  ;;  %vm26_vm3 = vcmask 7168  }
   0x4   :  { %v264_v8 = vld [vmem:[%s401_s2] ss:$0 sm:$0xff]  ;;  %v304_v17 = vmov -1e+30   ;;  %v305_v18 = vmov 0.0   ;;  %v374_v20 = vld [vmem:[%s403_s4 + $0x8] sm:$0xff] }
   0x5   :  { %v353_v7 = vand.u32 127, %v79_v6  ;;  %27 = vst.msk [vmem:[#allocation2] sm:$0xff] %vm26_vm3, %v304_v17  ;;  %v369_v19 = vld [vmem:[%s403_s4] sm:$0xff]  ;;  %v199_v22 = vsel %vm26_vm3, %v374_v20, 0.0  ;;  %vm180_vm6 = vcmp.gt.f32.partialorder %v374_v20, 0.0  ;;  %s306_s4 = smov [#allocation5]  }
   0x6   :  { %71 = vmatpush.bf16.msra.mxu0 %v255_v3  ;;  %28 = vst.msk [vmem:[#allocation2 + $0x8] sm:$0xff] %vm26_vm3, %v304_v17  ;;  %v198_v21 = vsel %vm26_vm3, %v369_v19, 0.0  ;;  %vm179_vm5 = vcmp.gt.f32.partialorder %v369_v19, 0.0  ;;  %s230_s30 = sshll.u32 %s306_s4, 4  ;;  %s232_s8 = sshll.u32 %s404_s5, 4  ;;  %s231_s30 = int_to_ptr.vmem [resolvable:$true] %s230_s30  ;;  %s233_s8 = int_to_ptr.hbm [resolvable:$true] %s232_s8 }
   0x7   :  { %vm83_vm1 = vcmp.lt.s32.totalorder %v353_v7, 100  ;;  %29 = vst.msk [vmem:[#allocation4] sm:$0xff] %vm26_vm3, %v304_v17  ;;  %v200_v23 = vadd.f32 %v199_v22, %v198_v21  ;;  %vm208_vm8 = vcmp.eq.s32.totalorder %v353_v7, 0  ;;  %vm216_vm9 = vcmp.eq.s32.totalorder %v353_v7, 1 }
   0x8   :  { %30 = vst.msk [vmem:[#allocation4 + $0x8] sm:$0xff] %vm26_vm3, %v304_v17 }
   0x9   :  { %253 = vmatmul.msk.bf16.vlgmr.msra.gmra.mxu0 %vm60_vm0, %v254_v4  ;;  %31 = vst.msk [vmem:[#allocation3] sm:$0xff] %vm26_vm3, %v305_v18  ;;  %v201_v24 = vrot.slane %v200_v23, 4 }
   0xa   :  { %92 = vperm.xlu2 %262, %v87_v5   ;;  %32 = vst.msk [vmem:[#allocation3 + $0x8] sm:$0xff] %vm26_vm3, %v305_v18 }
   0xb   :  { %v202_v25 = vadd.f32 %v201_v24, %v200_v23 }
   0xc   :  { %v109_v31 = vld [vmem:[#allocation2] sm:$0xff] }
   0xd   :  { %v203_v26 = vrot.slane %v202_v25, 2  ;;  %v110_v38 = vld [vmem:[#allocation2 + $0x8] sm:$0xff] }
   0xe   :  { %v102_v32 = vld [vmem:[#allocation4] sm:$0xff] }
   0xf   :  { %v204_v28 = vadd.f32 %v203_v26, %v202_v25  ;;  %v103_v60 = vld [vmem:[#allocation4 + $0x8] sm:$0xff] }
  0x10   :  { %v117_v54 = vld [vmem:[#allocation3] sm:$0xff] }
  0x11   :  { %v205_v29 = vrot.slane %v204_v28, 1  ;;  %v118_v59 = vld [vmem:[#allocation3 + $0x8] sm:$0xff] }
  0x13   :  { %v206_v30 = vadd.f32 %v205_v29, %v204_v28 }
  0x5c   :  { %v90_v9 = vpop.permute.xlu2 %89 }
  0x5d   :  { %vm94_vm2 = vcmp.eq.s32.totalorder %v353_v7, %v90_v9 }
  0x64   :  { %v93_v27 = vpop.permute.xlu2 %92 }
  0x65   :  { %vm95_vm4 = vcmp.eq.s32.totalorder %v353_v7, %v93_v27 }
  0x86   :  { %v73_v10 = vpop.f32.mrf.mxu0 }
  0x87   :  { %v74_v11 = vadd.f32 %v264_v8, %v73_v10 }
  0x89   :  { %v84_v12 = vsel %vm83_vm1, %v74_v11, -1e+30 }
  0x8a   :  { %111 = vmax.xlane.f32.xlu0 %v84_v12  ;;  %v96_v13 = vsel %vm94_vm2, %v84_v12, -1e+30 }
  0x8b   :  { %98 = vmax.xlane.f32.xlu2 %v96_v13 }
  0x8e   :  { %v75_v14 = vpop.f32.mrf.mxu0 }
  0x8f   :  { %v76_v15 = vadd.f32 %v264_v8, %v75_v14 }
  0x91   :  { %v85_v16 = vsel %vm83_vm1, %v76_v15, -1e+30 }
  0x92   :  { %113 = vmax.xlane.f32.xlu0 %v85_v16  ;;  %v97_v50 = vsel %vm95_vm4, %v85_v16, -1e+30 }
  0xa3   :  { %220 = vperm.xlu2 %262, %v206_v30  }
  0xfd   :  { %v112_v33 = vpop.xlane.xlu0 %111 }
  0xfe   :  { %v115_v34 = vmax.f32 %v109_v31, %v112_v33  ;;  %v99_v35 = vpop.xlane.xlu2 %98 }
  0xff   :  { %v104_v36 = vmax.f32 %v102_v32, %v99_v35 }
 0x100   :  { %v119_v37 = vsub.f32 %v109_v31, %v115_v34  ;;  %151 = vst.msk [vmem:[#allocation2] sm:$0xff] %vm26_vm3, %v115_v34  ;;  %129 = vperm.xlu1 %261, %v115_v34  }
 0x101   :  { %107 = vst.msk [vmem:[#allocation4] sm:$0xff] %vm26_vm3, %v104_v36 }
 0x102   :  { %v121_v51 = vmul.f32 1.442695, %v119_v37 }
 0x105   :  { %v114_v39 = vpop.xlane.xlu0 %113 }
 0x106   :  { %v116_v40 = vmax.f32 %v110_v38, %v114_v39  ;;  %v221_v33 = vpop.permute.xlu2 %220 }
 0x107   :  { %v169_v8 = vld [vmem:[#allocation2] sm:$0xff] }
 0x108   :  { %v120_v41 = vsub.f32 %v110_v38, %v116_v40  ;;  %152 = vst.msk [vmem:[#allocation2 + $0x8] sm:$0xff] %vm26_vm3, %v116_v40  ;;  %134 = vperm.xlu1 %261, %v116_v40   ;;  %v181_v10 = vld [vmem:[#allocation4] sm:$0xff] }
 0x10a   :  { %v123_v52 = vmul.f32 1.442695, %v120_v41 }
 0x10f   :  { %v170_v14 = vld [vmem:[#allocation2 + $0x8] sm:$0xff] }
 0x172   :  { %v130_v42 = vpop.permute.xlu1 %129 }
 0x173   :  { %v137_v43 = vsub.f32 %v84_v12, %v130_v42 }
 0x175   :  { %v139_v44 = vmul.f32 1.442695, %v137_v43 }
 0x177   :  { %265 = vpow2.f32 %v139_v44 }
 0x17a   :  { %v135_v45 = vpop.permute.xlu1 %134 }
 0x17b   :  { %v138_v46 = vsub.f32 %v85_v16, %v135_v45 }
 0x17d   :  { %v266_v47 = vpop.eup %265  ;;  %v141_v48 = vmul.f32 1.442695, %v138_v46 }
 0x17e   :  { %143 = vadd.xlane.f32.xlu0 %v266_v47 }
 0x17f   :  { %267 = vpow2.f32 %v141_v48 }
 0x180   :  { %269 = vpow2.f32 %v121_v51 }
 0x181   :  { %271 = vpow2.f32 %v123_v52 }
 0x185   :  { %v268_v49 = vpop.eup %267 }
 0x186   :  { %100 = vmax.xlane.f32.xlu0 %v97_v50  ;;  %145 = vadd.xlane.f32.xlu1 %v268_v49  ;;  %v270_v53 = vpop.eup %269 }
 0x187   :  { %v125_v55 = vmul.f32 %v270_v53, %v117_v54  ;;  %v272_v58 = vpop.eup %271 }
 0x188   :  { %v126_v61 = vmul.f32 %v272_v58, %v118_v59 }
 0x1f1   :  { %v144_v56 = vpop.xlane.xlu0 %143 }
 0x1f2   :  { %v147_v57 = vadd.f32 %v144_v56, %v125_v55 }
 0x1f4   :  { %149 = vst.msk [vmem:[#allocation3] sm:$0xff] %vm26_vm3, %v147_v57 }
 0x1f9   :  { %v101_v62 = vpop.xlane.xlu0 %100  ;;  %v146_v63 = vpop.xlane.xlu1 %145 }
 0x1fa   :  { %v105_v0 = vmax.f32 %v103_v60, %v101_v62  ;;  %v148_v1 = vadd.f32 %v146_v63, %v126_v61 }
 0x1fb   :  { %v171_v2 = vld [vmem:[#allocation3] sm:$0xff] }
 0x1fc   :  { %108 = vst.msk [vmem:[#allocation4 + $0x8] sm:$0xff] %vm26_vm3, %v105_v0  ;;  %273 = vlog2.f32 %v171_v2 }
 0x1fd   :  { %150 = vst.msk [vmem:[#allocation3 + $0x8] sm:$0xff] %vm26_vm3, %v148_v1 }
 0x202   :  { %v274_v3 = vpop.eup %273 }
 0x203   :  { %v174_v4 = vmul.f32 0.6931472, %v274_v3  ;;  %v182_v17 = vld [vmem:[#allocation4 + $0x8] sm:$0xff] }
 0x204   :  { %v172_v5 = vld [vmem:[#allocation3 + $0x8] sm:$0xff] }
 0x205   :  { %275 = vlog2.f32 %v172_v5  ;;  %v177_v9 = vadd.f32 %v174_v4, %v169_v8 }
 0x207   :  { %v183_v11 = vsub.f32 %v177_v9, %v181_v10 }
 0x209   :  { %v185_v16 = vmul.f32 %v183_v11, %v369_v19  ;;  %v158_v19 = vshrl.u32 %v79_v6, 7 }
 0x20b   :  { %v276_v12 = vpop.eup %275  ;;  %v187_v22 = vsel %vm179_vm5, %v185_v16, 0.0  ;;  %vm207_vm7 = vcmp.eq.s32.totalorder %v158_v19, 0 }
 0x20c   :  { %v176_v13 = vmul.f32 0.6931472, %v276_v12  ;;  %v189_v24 = vsel %vm26_vm3, %v187_v22, 0.0  ;;  %vm209_vm10 = vmand %vm207_vm7, %vm208_vm8 }
 0x20d   :  { %vm217_vm11 = vmand %vm207_vm7, %vm216_vm9 }
 0x20e   :  { %v178_v15 = vadd.f32 %v176_v13, %v170_v14 }
 0x210   :  { %v184_v18 = vsub.f32 %v178_v15, %v182_v17 }
 0x212   :  { %v186_v21 = vmul.f32 %v184_v18, %v374_v20 }
 0x214   :  { %v188_v23 = vsel %vm180_vm6, %v186_v21, 0.0 }
 0x215   :  { %v190_v25 = vsel %vm26_vm3, %v188_v23, 0.0 }
 0x216   :  { %v191_v26 = vadd.f32 %v190_v25, %v189_v24 }
 0x218   :  { %v192_v27 = vrot.slane %v191_v26, 4 }
 0x21a   :  { %v193_v28 = vadd.f32 %v192_v27, %v191_v26 }
 0x21c   :  { %v194_v29 = vrot.slane %v193_v28, 2 }
 0x21e   :  { %v195_v30 = vadd.f32 %v194_v29, %v193_v28 }
 0x220   :  { %v196_v31 = vrot.slane %v195_v30, 1 }
 0x222   :  { %v197_v32 = vadd.f32 %v196_v31, %v195_v30 }
 0x224   :  { %212 = vperm.xlu0 %263, %v197_v32  }
 0x296   :  { %v213_v20 = vpop.permute.xlu0 %212 }
 0x297   :  { %v215_v34 = vsel %vm209_vm10, %v213_v20, 0.0 }
 0x298   :  { %v223_v35 = vsel %vm217_vm11, %v221_v33, %v215_v34 }
 0x299   :  { %224 = vst [vmem:[#allocation5] sm:$0xff] %v223_v35 }
 0x29a   :  { %235 = dma.vmem_to_hbm [thread:$0]  %s231_s30, 128, %s233_s8, [#allocation6]  }
 0x29b   :  { %301 = dma.done.wait [#allocation6], 128  }
 0x29c   :  { %302 = vsyncadd [#allocation6], 4294967168 }
 0x29d   :  { %240 = vsyncpa [#allocation6], 1 }

</bundles_post_ra>
